<compile_context>
chip_gen: v6e
topology: v6e:2x2x1
jax: 0.10.0
libtpu: 0.0.40
codegen_flags: <defaults>
</compile_context>

<pallas_src>
import jax
import jax.numpy as jnp
from jax.experimental import pallas as pl
from jax.experimental.pallas import tpu as pltpu

LN_EPS = 1e-5  # nn.LayerNorm default


def _round_up(a, b):
    return (a + b - 1) // b * b


def _sublane(itemsize):
    # rows-per-sublane packing: f32 -> 8, bf16 -> 16, int8/fp8 -> 32
    return {4: 8, 2: 16, 1: 32}.get(itemsize, 8)


def _prenorm_linear_kernel(x_ref, g_ref, b_ref, w_ref, bias_ref, o_ref):
    # x_ref: (rt, D) tile of rows; reductions over the feature axis D.
    x = x_ref[...].astype(jnp.float32)

    # --- LayerNorm over last axis (two-pass biased variance, = PyTorch) ---
    mean = jnp.mean(x, axis=-1, keepdims=True)
    xc = x - mean
    var = jnp.mean(xc * xc, axis=-1, keepdims=True)
    inv_std = jax.lax.rsqrt(var + LN_EPS)
    y = xc * inv_std * g_ref[...].astype(jnp.float32) \
        + b_ref[...].astype(jnp.float32)

    # --- fn: Linear(dim -> dim_out)  (y @ W + bias) on the MXU ---
    # Matmul runs in W's dtype (bf16 when the caller pre-casts W), f32 accum.
    out = jnp.dot(y.astype(w_ref.dtype), w_ref[...],
                  preferred_element_type=jnp.float32)
    out = out + bias_ref[...].astype(jnp.float32)
    o_ref[...] = out.astype(o_ref.dtype)


def prenorm_linear(x, gamma, beta, w, bias, *, out_dtype=None,
                   max_row_tile=4096,
                   vmem_budget_bytes=16 * 1024 * 1024,
                   vmem_limit_bytes=32 * 1024 * 1024):
    """PreNorm(dim, Linear(dim, dim_out)) forward.

    x: (B, S, D); gamma/beta: (D,); w: (D, D_out) (pass bf16 for the fast MXU
    path — cast it once at model init, not per call); bias: (D_out,).
    """
    B, S, D = x.shape
    D_out = w.shape[1]
    R = B * S
    out_dtype = x.dtype if out_dtype is None else jnp.dtype(out_dtype)

    x_isz = jnp.dtype(x.dtype).itemsize
    w_isz = jnp.dtype(w.dtype).itemsize
    o_isz = jnp.dtype(out_dtype).itemsize
    sub = max(_sublane(x_isz), _sublane(o_isz))

    # ---- N (D_out) tile: keep W fully resident (single-buffered) when it
    # fits half the budget; otherwise stream (D, tn) column panels so the row
    # tile never collapses because of a big W.
    if D * D_out * w_isz <= vmem_budget_bytes // 2:
        tn = D_out
    else:
        tn = (vmem_budget_bytes // 2) // (2 * D * w_isz)   # double-buffered
        tn = max(128, tn // 256 * 256)                     # MXU-friendly panels
        tn = min(tn, _round_up(D_out, 128))
    n_steps = pl.cdiv(D_out, tn)
    consts_invariant = (n_steps == 1)     # W/bias grid-invariant only then
    w_vmem_bufs = 1 if consts_invariant else 2

    # ---- row tile: as large as the remaining budget allows.  Accounts for
    # the DMA buffers AND the in-kernel f32 temporaries (x, y, cast, accum).
    per_row = (2 * D * x_isz          # x tile, double-buffered
               + 2 * tn * o_isz       # out tile, double-buffered
               + 4 * D                # x in f32
               + 4 * D                # y in f32
               + w_isz * D            # y cast to matmul dtype
               + 4 * tn)              # f32 matmul accumulator
    const_bytes = (w_vmem_bufs * D * tn * w_isz      # W
                   + 2 * (2 * D + tn) * 4)           # gamma/beta/bias (generous)
    avail = max(vmem_budget_bytes - const_bytes, per_row * sub)
    rt = max(sub, min(max_row_tile, avail // per_row) // sub * sub)
    if rt >= R:
        if R >= 2 * sub:
            # keep >=2 row steps so both TensorCores get work (v7x megacore)
            rt = _round_up(pl.cdiv(R, 2), sub)
        else:
            rt = R                     # full-extent block (always legal)
    rows_steps = pl.cdiv(R, rt)        # partial edge block is masked by Pallas
    grid = (rows_steps, n_steps)

    # view-only reshapes: no HBM copies
    x2 = x.reshape(R, D)
    gamma2 = gamma.reshape(1, D)
    beta2 = beta.reshape(1, D)
    bias2 = bias.reshape(1, D_out)

    single = pl.Buffered(1)                         # grid-invariant operands
    w_mode = single if consts_invariant else None   # stream W when N is tiled

    out2 = pl.pallas_call(
        _prenorm_linear_kernel,
        out_shape=jax.ShapeDtypeStruct((R, D_out), out_dtype),
        grid_spec=pltpu.PrefetchScalarGridSpec(
            num_scalar_prefetch=0,
            grid=grid,
            in_specs=[
                pl.BlockSpec((rt, D), lambda i, n: (i, 0)),                        # x rows
                pl.BlockSpec((1, D), lambda i, n: (0, 0), pipeline_mode=single),   # gamma
                pl.BlockSpec((1, D), lambda i, n: (0, 0), pipeline_mode=single),   # beta
                pl.BlockSpec((D, tn), lambda i, n: (0, n), pipeline_mode=w_mode),  # W
                pl.BlockSpec((1, tn), lambda i, n: (0, n), pipeline_mode=w_mode),  # bias
            ],
            out_specs=pl.BlockSpec((rt, tn), lambda i, n: (i, n)),
        ),
        compiler_params=pltpu.CompilerParams(
            dimension_semantics=("parallel", "arbitrary"),
            vmem_limit_bytes=vmem_limit_bytes,
        ),
    )(x2, gamma2, beta2, w, bias2)

    return out2.reshape(B, S, D_out)


def prenorm_linear_ref(x, gamma, beta, w, bias):
    """Pure-JAX reference mirroring the kernel math (f32 LN, W-dtype matmul)."""
    xf = x.astype(jnp.float32)
    mean = jnp.mean(xf, axis=-1, keepdims=True)
    var = jnp.mean((xf - mean) ** 2, axis=-1, keepdims=True)
    y = (xf - mean) * jax.lax.rsqrt(var + LN_EPS)
    y = y * gamma.astype(jnp.float32) + beta.astype(jnp.float32)
    out = jnp.dot(y.astype(w.dtype), w, preferred_element_type=jnp.float32)
    return (out + bias.astype(jnp.float32)).astype(x.dtype)


if __name__ == "__main__":
    key = jax.random.PRNGKey(0)
    # Small demo shapes; D = D_out = 128 keeps lanes dense (multiple of 128).
    B, S, D = 2, 8, 128
    D_out = D

    kx, kw, kb = jax.random.split(key, 3)
    x = jax.random.normal(kx, (B, S, D), dtype=jnp.float32)

    # nn.LayerNorm(dim) init: weight = 1, bias = 0
    gamma = jnp.ones((D,), dtype=jnp.float32)
    beta = jnp.zeros((D,), dtype=jnp.float32)

    # Deterministic weights for fn = Linear(dim, dim_out)
    bound = 1.0 / (D ** 0.5)
    w = jax.random.uniform(kw, (D, D_out), minval=-bound, maxval=bound,
                           dtype=jnp.float32)
    bias = jax.random.uniform(kb, (D_out,), minval=-bound, maxval=bound,
                              dtype=jnp.float32)

    # Cast W to the MXU operand dtype ONCE at "model init" (hoisted out of
    # the per-call path per the perf review).
    w_bf16 = w.astype(jnp.bfloat16)

    out = prenorm_linear(x, gamma, beta, w_bf16, bias)
    out = jax.block_until_ready(out)

    ref = prenorm_linear_ref(x, gamma, beta, w_bf16, bias)
    assert out.shape == (B, S, D_out)
    assert jnp.allclose(out, ref, atol=1e-2, rtol=1e-2), "mismatch vs reference"

    print("KERNEL_OK")
</pallas_src>

<mosaic_0001>
module attributes {stable_mosaic.version = 11 : i64} {
  func.func @_prenorm_linear_kernel(%arg0: i32, %arg1: i32, %arg2: memref<8x128xf32, #tpu.memory_space<vmem>>, %arg3: memref<1x128xf32, #tpu.memory_space<vmem>>, %arg4: memref<1x128xf32, #tpu.memory_space<vmem>>, %arg5: memref<128x128xbf16, #tpu.memory_space<vmem>>, %arg6: memref<1x128xf32, #tpu.memory_space<vmem>>, %arg7: memref<8x128xf32, #tpu.memory_space<vmem>>) attributes {dimension_semantics = [#tpu.dimension_semantics<parallel>, #tpu.dimension_semantics<arbitrary>], iteration_bounds = array<i64: 2, 1>, scalar_prefetch = 0 : i64, scratch_operands = 0 : i64, tpu.core_type = #tpu.core_type<tc>, window_params = [{transform_indices = @transform_0, window_bounds = array<i64: 8, 128>}, {pipeline_mode = #tpu.pipeline_mode<synchronous>, transform_indices = @transform_1, window_bounds = array<i64: 1, 128>}, {pipeline_mode = #tpu.pipeline_mode<synchronous>, transform_indices = @transform_2, window_bounds = array<i64: 1, 128>}, {pipeline_mode = #tpu.pipeline_mode<synchronous>, transform_indices = @transform_3, window_bounds = array<i64: 128, 128>}, {pipeline_mode = #tpu.pipeline_mode<synchronous>, transform_indices = @transform_4, window_bounds = array<i64: 1, 128>}, {transform_indices = @transform_5, window_bounds = array<i64: 8, 128>}]} {
    %c0 = arith.constant 0 : index
    %c0_0 = arith.constant 0 : index
    %0 = vector.load %arg2[%c0, %c0_0] : memref<8x128xf32, #tpu.memory_space<vmem>>, vector<8x128xf32>
    %cst = arith.constant dense<0.000000e+00> : vector<8xf32>
    %1 = vector.multi_reduction <add>, %0, %cst [1] : vector<8x128xf32> to vector<8xf32>
    %2 = vector.shape_cast %1 : vector<8xf32> to vector<8x1xf32>
    %cst_1 = arith.constant 1.280000e+02 : f32
    %3 = vector.broadcast %cst_1 : f32 to vector<8x1xf32>
    %4 = arith.divf %2, %3 : vector<8x1xf32>
    %5 = vector.broadcast %4 : vector<8x1xf32> to vector<8x128xf32>
    %6 = arith.subf %0, %5 : vector<8x128xf32>
    %7 = arith.mulf %6, %6 : vector<8x128xf32>
    %cst_2 = arith.constant dense<0.000000e+00> : vector<8xf32>
    %8 = vector.multi_reduction <add>, %7, %cst_2 [1] : vector<8x128xf32> to vector<8xf32>
    %9 = vector.shape_cast %8 : vector<8xf32> to vector<8x1xf32>
    %cst_3 = arith.constant 1.280000e+02 : f32
    %10 = vector.broadcast %cst_3 : f32 to vector<8x1xf32>
    %11 = arith.divf %9, %10 : vector<8x1xf32>
    %cst_4 = arith.constant 9.99999974E-6 : f32
    %12 = vector.broadcast %cst_4 : f32 to vector<8x1xf32>
    %13 = arith.addf %11, %12 : vector<8x1xf32>
    %14 = math.rsqrt %13 : vector<8x1xf32>
    %15 = vector.broadcast %14 : vector<8x1xf32> to vector<8x128xf32>
    %16 = arith.mulf %6, %15 : vector<8x128xf32>
    %c0_5 = arith.constant 0 : index
    %c0_6 = arith.constant 0 : index
    %17 = vector.load %arg3[%c0_5, %c0_6] : memref<1x128xf32, #tpu.memory_space<vmem>>, vector<1x128xf32>
    %18 = vector.broadcast %17 : vector<1x128xf32> to vector<8x128xf32>
    %19 = arith.mulf %16, %18 : vector<8x128xf32>
    %c0_7 = arith.constant 0 : index
    %c0_8 = arith.constant 0 : index
    %20 = vector.load %arg4[%c0_7, %c0_8] : memref<1x128xf32, #tpu.memory_space<vmem>>, vector<1x128xf32>
    %21 = vector.broadcast %20 : vector<1x128xf32> to vector<8x128xf32>
    %22 = arith.addf %19, %21 : vector<8x128xf32>
    %23 = arith.truncf %22 : vector<8x128xf32> to vector<8x128xbf16>
    %c0_9 = arith.constant 0 : index
    %c0_10 = arith.constant 0 : index
    %24 = vector.load %arg5[%c0_9, %c0_10] : memref<128x128xbf16, #tpu.memory_space<vmem>>, vector<128x128xbf16>
    %cst_11 = arith.constant dense<0.000000e+00> : vector<8x128xf32>
    %25 = tpu.matmul %23, %24, %cst_11 {dimension_numbers = #tpu.dot_dimension_numbers<[1], [0], [0], [1], [0, 0, 1, 1], [], []>} : vector<8x128xbf16>, vector<128x128xbf16>, vector<8x128xf32> -> vector<8x128xf32>
    %c0_12 = arith.constant 0 : index
    %c0_13 = arith.constant 0 : index
    %26 = vector.load %arg6[%c0_12, %c0_13] : memref<1x128xf32, #tpu.memory_space<vmem>>, vector<1x128xf32>
    %27 = vector.broadcast %26 : vector<1x128xf32> to vector<8x128xf32>
    %28 = arith.addf %25, %27 : vector<8x128xf32>
    %c0_14 = arith.constant 0 : index
    %c0_15 = arith.constant 0 : index
    %29 = vector.load %arg7[%c0_14, %c0_15] : memref<8x128xf32, #tpu.memory_space<vmem>>, vector<8x128xf32>
    tpu.vector_store %arg7[%c0_14, %c0_15], %28 {strides = array<i32>} : memref<8x128xf32, #tpu.memory_space<vmem>>, vector<8x128xf32>,
    return
  }
  func.func @transform_0(%arg0: i32, %arg1: i32) -> (i32, i32) {
    %c0_i32 = arith.constant 0 : i32
    %c0_i32_0 = arith.constant 0 : i32
    return %arg0, %c0_i32 : i32, i32
  }
  func.func @transform_1(%arg0: i32, %arg1: i32) -> (i32, i32) {
    %c0_i32 = arith.constant 0 : i32
    %c0_i32_0 = arith.constant 0 : i32
    %c0_i32_1 = arith.constant 0 : i32
    return %c0_i32, %c0_i32_0 : i32, i32
  }
  func.func @transform_2(%arg0: i32, %arg1: i32) -> (i32, i32) {
    %c0_i32 = arith.constant 0 : i32
    %c0_i32_0 = arith.constant 0 : i32
    %c0_i32_1 = arith.constant 0 : i32
    return %c0_i32, %c0_i32_0 : i32, i32
  }
  func.func @transform_3(%arg0: i32, %arg1: i32) -> (i32, i32) {
    %c0_i32 = arith.constant 0 : i32
    %c0_i32_0 = arith.constant 0 : i32
    return %c0_i32, %arg1 : i32, i32
  }
  func.func @transform_4(%arg0: i32, %arg1: i32) -> (i32, i32) {
    %c0_i32 = arith.constant 0 : i32
    %c0_i32_0 = arith.constant 0 : i32
    return %c0_i32, %arg1 : i32, i32
  }
  func.func @transform_5(%arg0: i32, %arg1: i32) -> (i32, i32) {
    %c0_i32 = arith.constant 0 : i32
    return %arg0, %arg1 : i32, i32
  }
}

</mosaic_0001>

<bundles_post_ra>
// kernel: tpu_custom_call.1
= control target key start
LH: loop header
LB: loop body
LE: loop exit
PB: predicated region body
PF: predicated region fallthrough
CT: control target
= control target key end

     0   :  { %s1063_s0 = inlined_call_operand.hbm [shape: f32[16,128], index: 0, kind: input, shape index: {}]   ;;  %s1064_s1 = inlined_call_operand.vmem [shape: f32[1,128], index: 1, kind: input, shape index: {}]   ;;  %s1065_s2 = inlined_call_operand.vmem [shape: f32[1,128], index: 2, kind: input, shape index: {}]   ;;  %s1066_s3 = inlined_call_operand.hbm [shape: bf16[128,128], index: 3, kind: input, shape index: {}]   ;;  %s1067_s4 = inlined_call_operand.vmem [shape: f32[1,128], index: 4, kind: input, shape index: {}]   ;;  %s1068_s5 = inlined_call_operand.hbm [shape: f32[16,128], index: 5, kind: output, shape index: {}]  }
   0x1   :  { %1071 = sst [smem:[#allocation12_spill]] %s1066_s3 }
   0x2   :  { %10 = vsyncpa [#allocation3], 0 }
   0x3   :  { %12 = vsyncpa [#allocation3 + $0x1], 0 }
   0x4   :  { %13 = vsyncpa [#allocation6], 0 }
   0x5   :  { %14 = vsyncpa [#allocation4], 0 }
   0x6   :  { %16 = vsyncpa [#allocation4 + $0x1], 0  ;;  %s871_s18 = smov 0   ;;  %s873_s19 = smov 0  }
   0x7   :  { %s875_s20 = smov 0   ;;  %s877_s21 = smov 0  }
   0x8   :  { %s879_s22 = smov 0   ;;  %s881_s23 = smov 0  }
   0x9 LB: > { %s551_s24 = sadd.s32 4294967295, %s832_s23   ;;  %s552_s25 = sadd.s32 4294967294, %s832_s23   ;;  %s832_s23 = sphi %s881_s23, %s22_s23   ;;  %s828_s22 = sphi %s879_s22, %s1091_s22   ;;  %s824_s21 = sphi %s877_s21, %s1090_s21   ;;  %s820_s20 = sphi %s875_s20, %s1089_s20   ;;  %s816_s19 = sphi %s873_s19, %s1088_s19   ;;  %s812_s18 = sphi %s871_s18, %s1087_s18  }
   0xa   : > { %p54_p0 = scmp.ne.s32.totalorder %s816_s19, %s812_s18  ;;  %p905_p1 = scmp.eq.s32.totalorder %s551_s24, 0 }
   0xb   : > { %p909_p2 = scmp.eq.s32.totalorder %s551_s24, 1  ;;  %p180_p3 = scmp.eq.s32.totalorder %s552_s25, 1 }
   0xc   : > { %p915_p4 = por %p905_p1, %p54_p0  ;;  %p553_p5 = scmp.ge.s32.totalorder %s832_s23, 1 }
   0xd   : > { %p920_p6 = por %p180_p3, %p54_p0  ;;  %p187_p7 = scmp.lt.s32.totalorder %s832_s23, 3 }
   0xe   : > { %s1074_s28 = scalar_select %p915_p4, 1, 0 }
   0xf   : > { %s1075_s29 = scalar_select %p920_p6, 1, 0 }
  0x10   : > { %p925_p8 = pnand %p553_p5, %p187_p7  ;;  %s834_s6 = smov [#allocation5]  }
  0x11   : > { %s207_s7 = sshll.u32 %s834_s6, 4  ;;  %s34_s9 = sadd.s32 1, %s828_s22  ;;  %s208_s7 = int_to_ptr.vmem [resolvable:$true] %s207_s7 }
  0x12   : > { %p615_p9 = pneg %p925_p8  ;;  %s705_s10 = scalar_lea.vmem %s208_s7, 1024 }
  0x13   : > { %p706_p13 = scmp.ne.s32.totalorder %s208_s7, %s705_s10  ;;  %p713_p5 = scmp.lt.s32.totalorder %s208_s7, %s208_s7 }
  0x14   : > { %p934_p11 = pnand %p615_p9, %p905_p1  ;;  %p714_p7 = scmp.lt.s32.totalorder %s705_s10, %s705_s10 }
  0x16   : > { %p696_p12 = pneg %p934_p11  ;;  %p715_p6 = por %p714_p7, %p713_p5 }
  0x18   : > { %p708_p0 = pnand %p706_p13, %p696_p12 }
  0x1a   : > { %p709_p3 = pneg %p708_p0 }
  0x1c   : > { %p716_p4 = pnand %p715_p6, %p709_p3 }
  0x1e   : > { %719 = shalt.err (!%p716_p4)
}
  0x1f   : > { %s835_s11 = smov 64   ;;  %s836_s12 = smov 4  }
  0x20   : > { %s1078_s3 = sld [smem:[#allocation12_spill]]  ;;  %p36_p6 = scmp.ge.s32.totalorder %s34_s9, 2 }
  0x21   : > { %s41_s15 = sadd.s32 1, %s820_s20  ;;  %p48_p4 = scmp.ne.s32.totalorder %s820_s20, %s816_s19 }
  0x22   : > { %p49_p9 = scmp.eq.s32.totalorder %s832_s23, 0  ;;  %s1093_s9 = smov (%p36_p6, %s34_s9), 0 }
  0x23   : > { %1079 = sst [smem:[#allocation11_spill]] %s1093_s9  ;;  %p958_p13 = por %p909_p2, %p48_p4 }
  0x24   : > { %p952_p12 = por %p49_p9, %p48_p4  ;;  %s38_s24 = ssub.s32 %s828_s22, %s1093_s9 }
  0x25   : > { %p628_p0 = scmp.lt.s32.totalorder %s832_s23, 2  ;;  %s227_s25 = sand.u32 1, %s820_s20  }
  0x26   : > { %618 = dma.hbm_to_vmem [thread:$0]  (!%p934_p11), %s1078_s3, 1024, %s208_s7, [#allocation6], %s835_s11, %s835_s11, %s836_s12  }
  0x27   : > { %p39_p11 = scmp.eq.s32.totalorder %s38_s24, 0  ;;  %s557_s6 = sshll.u32 %s227_s25, 3 }
  0x28   : > { %s558_s8 = sshll.u32 %s828_s22, 7  ;;  %s231_s13 = scalar_lea.vmem [#allocation2], %s557_s6 }
  0x29   : > { %s967_s7 = scalar_select %p39_p11, %s820_s20, %s41_s15  }
  0x2a   : > { %s236_s12 = scalar_lea.hbm %s1063_s0, %s558_s8  ;;  %s238_s14 = sshll.u32 %s231_s13, 4  ;;  %s239_s14 = int_to_ptr.vmem [resolvable:$true] %s238_s14 }
  0x2b   : > { %p975_p2 = pnand %p628_p0, %p952_p12  ;;  %s228_s3 = scalar_lea.sflag [#allocation3], %s227_s25 }
  0x2c   : > { %s733_s24 = scalar_lea.vmem %s239_s14, 128  ;;  %s837_s15 = smov [#allocation2]  }
  0x2d   : > { %p722_p3 = pneg %p975_p2  ;;  %p734_p5 = scmp.ne.s32.totalorder %s239_s14, %s733_s24 }
  0x2e   : > { %s738_s9 = sshll.u32 %s837_s15, 4  ;;  %s739_s9 = int_to_ptr.vmem [resolvable:$false] %s738_s9 }
  0x2f   : > { %p736_p7 = pnand %p734_p5, %p722_p3  ;;  %s740_s8 = scalar_lea.vmem %s739_s9, 256 }
  0x30   : > { %p741_p4 = scmp.lt.s32.totalorder %s239_s14, %s739_s9  ;;  %p742_p9 = scmp.lt.s32.totalorder %s740_s8, %s733_s24 }
  0x31   : > { %p737_p6 = pneg %p736_p7 }
  0x32   : > { %p743_p11 = por %p742_p9, %p741_p4 }
  0x34   : > { %p744_p10 = pnand %p743_p11, %p737_p6 }
  0x36   : > { %747 = shalt.err (!%p744_p10)
}
  0x37   : > { %622 = dma.hbm_to_vmem [thread:$0]  (!%p975_p2), %s236_s12, 128, %s239_s14, %s228_s3  }
  0x38   : > { %247 = sbr.rel (%p925_p8) target bundleno = 582 (0x246), region = 40  ;;  %s986_s16 = sand.u32 (!%p925_p8), 1, %s816_s19  }
  0x39   : > { %s560_s25 = sshll.u32 (!%p925_p8), %s986_s16, 3  ;;  %s250_s6 = scalar_lea.sflag (!%p925_p8), [#allocation3], %s986_s16 }
  0x3a   : > { %s253_s9 = scalar_lea.vmem (!%p925_p8), [#allocation2], %s560_s25  ;;  %p1083_p12 = scmp.ne.s32.totalorder (!%p925_p8), %s1074_s28, 0 }
  0x3d   : > { %799 = dma.done.wait (%p1083_p12), %s250_s6, 128  }
  0x3e   : > { %801 = vsyncadd (%p1083_p12), %s250_s6, 4294967168 }
  0x3f   : > { %803 = dma.done.wait (%p905_p1), [#allocation6], 1024  }
  0x40   : > { %805 = vsyncadd (%p905_p1), [#allocation6], 4294966272  ;;  %v291_v0 = vld [vmem:[%s253_s9] sm:$0xff]  ;;  %v838_v2 = vmov 0.0   ;;  %v686_v8 = vld [vmem:[#allocation5 + $0x28] sm:$0xff]   ;;  %vm839_vm0 = vmmov 0  }
  0x41   : > { %292 = vadd.xlane.f32.xlu0 %v291_v0  ;;  %v684_v1 = vld [vmem:[#allocation5 + $0x38] sm:$0xff]   ;;  %587 = vmatprep.subr.bf16.mxu0 %v838_v2  ;;  %v685_v3 = vld [vmem:[#allocation5 + $0x30] sm:$0xff]   ;;  %v687_v9 = vld [vmem:[#allocation5 + $0x20] sm:$0xff]   ;;  %s575_s12 = sshll.u32 %s824_s21, 7  ;;  %s286_s13 = scalar_lea.vmem [#allocation7], %s560_s25 }
  0x42   : > { %588 = vmatpush3.bf16.msra.mxu0 %v684_v1  ;;  %603 = vmatprep.mubr.msk.bf16.mxu0 %vm839_vm0, %v838_v2  ;;  %v688_v10 = vld [vmem:[#allocation5 + $0x18] sm:$0xff]   ;;  %v689_v11 = vld [vmem:[#allocation5 + $0x10] sm:$0xff]   ;;  %v690_v12 = vld [vmem:[#allocation5 + $0x8] sm:$0xff]   ;;  %s448_s14 = sshll.u32 %s286_s13, 4  ;;  %s1015_s15 = scalar_lea.hbm %s1068_s5, %s575_s12  ;;  %s1017_s14 = int_to_ptr.vmem [resolvable:$true] %s448_s14 }
  0x43   : > { %589 = vmatprep.subr.bf16.mxu0 %v838_v2  ;;  %v691_v13 = vld [vmem:[#allocation5] sm:$0xff]   ;;  %v563_v18 = vld [vmem:[%s1064_s1] ss:$0 sm:$0xff]  ;;  %s434_s8 = scalar_lea.sflag [#allocation4], %s986_s16  ;;  %s748_s21 = scalar_lea.vmem %s1017_s14, 128 }
  0x44   : > { %v564_v20 = vld [vmem:[%s1065_s2] ss:$0 sm:$0xff]  ;;  %p749_p1 = scmp.ne.s32.totalorder %s1017_s14, %s748_s21  ;;  %s840_s25 = smov [#allocation7]  }
  0x45   : > { %v565_v24 = vld [vmem:[%s1067_s4] ss:$0 sm:$0xff]  ;;  %s752_s6 = sshll.u32 %s840_s25, 4  ;;  %s753_s6 = int_to_ptr.vmem [resolvable:$false] %s752_s6 }
  0x46   : > { %590 = vmatpush3.bf16.msra.mxu0 %v685_v3  ;;  %p750_p8 = pnand %p749_p1, %p958_p13  ;;  %s754_s9 = scalar_lea.vmem %s753_s6, 256 }
  0x47   : > { %591 = vmatprep.subr.bf16.mxu0 %v838_v2  ;;  %p755_p0 = scmp.lt.s32.totalorder %s1017_s14, %s753_s6  ;;  %p756_p2 = scmp.lt.s32.totalorder %s754_s9, %s748_s21 }
  0x48   : > { %p751_p10 = pneg %p750_p8 }
  0x49   : > { %p757_p3 = por %p756_p2, %p755_p0 }
  0x4a   : > { %592 = vmatpush3.bf16.msra.mxu0 %v686_v8 }
  0x4b   : > { %593 = vmatprep.subr.bf16.mxu0 %v838_v2  ;;  %p758_p5 = pnand %p757_p3, %p751_p10 }
  0x4e   : > { %594 = vmatpush3.bf16.msra.mxu0 %v687_v9 }
  0x4f   : > { %595 = vmatprep.subr.bf16.mxu0 %v838_v2 }
  0x52   : > { %596 = vmatpush3.bf16.msra.mxu0 %v688_v10 }
  0x53   : > { %597 = vmatprep.subr.bf16.mxu0 %v838_v2 }
  0x56   : > { %598 = vmatpush3.bf16.msra.mxu0 %v689_v11 }
  0x57   : > { %599 = vmatprep.subr.bf16.mxu0 %v838_v2 }
  0x5a   : > { %600 = vmatpush3.bf16.msra.mxu0 %v690_v12 }
  0x5b   : > { %601 = vmatprep.subr.bf16.mxu0 %v838_v2 }
  0x5e   : > { %602 = vmatpush3.bf16.msra.mxu0 %v691_v13 }
  0xca   : > { %v293_v4 = vpop.xlane.xlu0 %292 }
  0xcb   : > { %v295_v5 = vmul.f32 0.0078125, %v293_v4 }
  0xcd   : > { %v296_v6 = vsub.f32 %v291_v0, %v295_v5 }
  0xcf   : > { %v297_v7 = vmul.f32 %v296_v6, %v296_v6 }
  0xd1   : > { %298 = vadd.xlane.f32.xlu0 %v297_v7 }
 0x15a   : > { %v299_v14 = vpop.xlane.xlu0 %298 }
 0x15b   : > { %v300_v15 = vmul.f32 0.0078125, %v299_v14 }
 0x15d   : > { %v301_v16 = vadd.f32 1e-05, %v300_v15 }
 0x15f   : > { %692 = vrsqrt.f32 %v301_v16 }
 0x16c   : > { %v693_v17 = vpop.eup %692 }
 0x16d   : > { %v303_v19 = vmul.f32 %v693_v17, %v296_v6 }
 0x16f   : > { %v311_v21 = vmul.f32 %v563_v18, %v303_v19 }
 0x171   : > { %v319_v22 = vadd.f32 %v564_v20, %v311_v21 }
 0x173   : > { %v320_v23 = vpack.c.bf16 %v319_v22, %v319_v22 }
 0x175   : > { %604 = vmatmul.mubr.bf16.vlgmr.msra.gmra.mxu0 %v320_v23 }
 0x235   : > { %v426_v25 = vpop.f32.mrf.mxu0 }
 0x236   : > { %v427_v26 = vadd.f32 %v565_v24, %v426_v25 }
 0x237   : > { %v605_v27 = vpop.f32.mrf.mxu0 }
 0x238   : > { %432 = vst [vmem:[%s286_s13] sm:$0xff] %v427_v26 }
 0x239   : > { %v429_v28 = vpop.f32.mrf.mxu0 }
 0x23a   : > { %761 = shalt.err (!%p758_p5)
}
 0x23b   : > { %s762_s3 = scalar_lea.hbm %s1015_s15, 128  ;;  %s766_s28 = scalar_lea.hbm %s1068_s5, 256 }
 0x23c   : > { %p763_p7 = scmp.ne.s32.totalorder %s1015_s15, %s762_s3  ;;  %p767_p9 = scmp.lt.s32.totalorder %s1015_s15, %s1068_s5 }
 0x23d   : > { %p768_p11 = scmp.lt.s32.totalorder %s766_s28, %s762_s3 }
 0x23e   : > { %p764_p6 = pnand %p763_p7, %p958_p13 }
 0x23f   : > { %p769_p12 = por %p768_p11, %p767_p9 }
 0x240   : > { %p765_p4 = pneg %p764_p6 }
 0x242   : > { %p770_p1 = pnand %p769_p12, %p765_p4 }
 0x244   : > { %773 = shalt.err (!%p770_p1)
}
 0x245   : > { %613 = dma.vmem_to_hbm [thread:$0]  (%p958_p13), %s1017_s14, 128, %s1015_s15, %s434_s8   ;;  %v606_v29 = vpop.f32.mrf.mxu0 }
 0x246 PF: > { %s460_s11 = sand.u32 1, %s812_s18   ;;  %p1084_p8 = scmp.ne.s32.totalorder %s1075_s29, 0 }
 0x247   : > { %p1085_p10 = scmp.ge.s32.totalorder %s832_s23, 2  ;;  %s461_s12 = scalar_lea.sflag [#allocation4], %s460_s11 }
 0x249   : > { %p624_p0 = pnand %p1085_p10, %p1084_p8 }
 0x24b   : > { %p625_p2 = pneg %p624_p0 }
 0x24d   : > { %807 = dma.done.wait (%p625_p2), %s461_s12, 128  }
 0x24e   : > { %809 = vsyncadd (%p625_p2), %s461_s12, 4294967168  ;;  %s22_s23 = sadd.s32 1, %s832_s23   ;;  %s1086_s17 = sld [smem:[#allocation11_spill]] }
 0x24f   : > { %p19_p3 = scmp.ge.s32.totalorder %s22_s23, 4   ;;  %s1087_s18 = smov %s816_s19 }
 0x250   : > { %s1088_s19 = smov %s820_s20  ;;  %s1089_s20 = smov %s967_s7 }
 0x251   : > { %s1090_s21 = smov %s828_s22  ;;  %21 = sbr.rel (!%p19_p3) target bundleno = 9 (0x9), region = 93 }
 0x254   : > { %s1091_s22 = smov %s1086_s17 }
 0x256   :  { %466 = vsyncpa [#allocation3], 1 }
 0x257   :  { %468 = vsyncpa [#allocation3 + $0x1], 1 }
 0x258   :  { %469 = vsyncpa [#allocation6], 1 }
 0x259   :  { %470 = vsyncpa [#allocation4], 1 }
 0x25a   :  { %472 = vsyncpa [#allocation4 + $0x1], 1 }

</bundles_post_ra>
